<compile_context>
chip_gen: v7x
topology: tpu7x:2x2x1
jax: 0.10.0
libtpu: 0.0.40
codegen_flags: <defaults>
</compile_context>

<pallas_src>
import functools

import jax
import jax.numpy as jnp
from jax.experimental import pallas as pl
from jax.experimental.pallas import tpu as pltpu

LANES = 128
_TILE_ROWS_CAP = 4096   # 4096 * 128 * 4 B = 2 MiB per f32 tile buffer


def _choose_tiling(total_elems):
    """Pick (tile_rows, num_tiles, padded_rows) for a lane-dense (rows, 128) view."""
    rows = -(-total_elems // LANES)                 # ceil-div
    num_tiles = -(-rows // _TILE_ROWS_CAP)
    tile_rows = -(-rows // num_tiles)
    if num_tiles > 1:
        tile_rows = -(-tile_rows // 8) * 8          # keep (8,128)-divisible blocks
    padded_rows = num_tiles * tile_rows
    return tile_rows, num_tiles, padded_rows


def _quant_measure_kernel(x_ref, rzp_ref, rrng_ref, nm_ref,
                          new_zp_ref, new_rng_ref, new_nm_ref,
                          qrange_ref, qzero_ref,
                          min_acc, max_acc):
    """Streaming global min/max + fused QuantMeasure buffer update.

    x_ref:    (tile_rows, 128) tile of the flattened input (native dtype)
    rzp/rrng/nm: (1,1) running_zero_point / running_range / num_measured
    outputs:  (1,1) new_zero_point, new_range, new_num_measured, qrange, qzero
    min_acc/max_acc: (tile_rows, 128) f32 VMEM accumulators (resident)
    """
    j = pl.program_id(0)

    @pl.when(j == 0)
    def _init():
        min_acc[...] = jnp.full(min_acc.shape, jnp.inf, dtype=min_acc.dtype)
        max_acc[...] = jnp.full(max_acc.shape, -jnp.inf, dtype=max_acc.dtype)

    # Hot loop: load + 2 elementwise VPU ops per tile (no per-tile XLU reduce,
    # no lane-width-1 partial stores).
    tile = x_ref[...].astype(jnp.float32)
    min_acc[...] = jnp.minimum(min_acc[...], tile)
    max_acc[...] = jnp.maximum(max_acc[...], tile)

    @pl.when(j == pl.num_programs(0) - 1)
    def _finalize():
        # Single cross-sublane + cross-lane reduce, once, at the last step.
        gmin = jnp.min(jnp.min(min_acc[...], axis=0, keepdims=True),
                       axis=1, keepdims=True)                     # (1,1)
        gmax = jnp.max(jnp.max(max_acc[...], axis=0, keepdims=True),
                       axis=1, keepdims=True)                     # (1,1)
        rng = gmax - gmin
        n = nm_ref[...]                                           # (1,1)
        momentum = n / (n + 1.0)
        qzero_ref[...] = gmin
        qrange_ref[...] = rng
        new_nm_ref[...] = n + 1.0
        new_zp_ref[...] = rzp_ref[...] * momentum + gmin * (1.0 - momentum)
        new_rng_ref[...] = rrng_ref[...] * momentum + rng * (1.0 - momentum)


@functools.partial(jax.jit, static_argnames=("tile_rows", "num_tiles"))
def _fused_quant_measure(x2d, rzp, rrng, nm, *, tile_rows, num_tiles):
    scalar_spec = pl.BlockSpec((1, 1), lambda j: (0, 0))
    out_shapes = tuple(jax.ShapeDtypeStruct((1, 1), jnp.float32) for _ in range(5))
    return pl.pallas_call(
        _quant_measure_kernel,
        out_shape=out_shapes,
        grid_spec=pltpu.PrefetchScalarGridSpec(
            num_scalar_prefetch=0,
            grid=(num_tiles,),
            in_specs=[
                pl.BlockSpec((tile_rows, LANES), lambda j: (j, 0)),
                scalar_spec, scalar_spec, scalar_spec,
            ],
            out_specs=[scalar_spec] * 5,
            scratch_shapes=[
                pltpu.VMEM((tile_rows, LANES), jnp.float32),
                pltpu.VMEM((tile_rows, LANES), jnp.float32),
            ],
        ),
        compiler_params=pltpu.CompilerParams(
            dimension_semantics=("arbitrary",),    # running reduction over tiles
            vmem_limit_bytes=32 * 1024 * 1024,     # explicit; safe on v5e/v6e/v7x
        ),
    )(x2d, rzp, rrng, nm)


def quant_measure_forward(x, num_bits, running_zero_point, running_range,
                          num_measured, percentage=0.99999):
    """Forward of QuantMeasure: returns updated buffers (torch forward returns
    None; only buffers change) plus the computed (range, zero_point)."""
    del num_bits  # carried in QParams in torch but unused by the buffer update

    B = x.shape[0]
    N = 1
    for d in x.shape[1:]:
        N *= d
    k = int(round((1.0 - percentage) * N + 0.5))
    if k != 1:
        # TODO(synk): k-th order statistic (torch.topk, k > 1) has no clean
        # Pallas equivalent; only the k == 1 (plain min/max) path is implemented.
        raise NotImplementedError("only the k == 1 (min/max) order statistic is implemented")

    total = B * N
    tile_rows, num_tiles, padded_rows = _choose_tiling(total)
    flat = jnp.reshape(x, (total,))                 # native dtype, no f32 copy
    padded_total = padded_rows * LANES
    if padded_total != total:
        # Pad with a replicated real element: neutral for both min and max.
        fill = jnp.broadcast_to(flat[:1], (padded_total - total,))
        flat = jnp.concatenate([flat, fill])
    x2d = jnp.reshape(flat, (padded_rows, LANES))   # sublane/lane-dense view

    rzp = jnp.reshape(running_zero_point.astype(jnp.float32), (1, 1))
    rrng = jnp.reshape(running_range.astype(jnp.float32), (1, 1))
    nm = jnp.reshape(num_measured.astype(jnp.float32), (1, 1))

    new_zp, new_rng, new_nm, qrange, qzero = _fused_quant_measure(
        x2d, rzp, rrng, nm, tile_rows=tile_rows, num_tiles=num_tiles)

    return (jnp.reshape(new_zp, (1,)),
            jnp.reshape(new_rng, (1,)),
            jnp.reshape(new_nm, (1,)),
            (qrange[0, 0], qzero[0, 0]))


if __name__ == "__main__":
    key = jax.random.PRNGKey(0)
    B, C, H, W = 2, 4, 16, 16
    x = jax.random.normal(key, (B, C, H, W), dtype=jnp.float32)  # NCHW

    # Buffers as in QuantMeasure.__init__(shape_measure=(1,))
    running_zero_point = jnp.zeros((1,), jnp.float32)
    running_range = jnp.zeros((1,), jnp.float32)
    num_measured = jnp.zeros((1,), jnp.float32)

    new_zp, new_rng, new_n, (qrange, qzero) = quant_measure_forward(
        x, num_bits=8,
        running_zero_point=running_zero_point,
        running_range=running_range,
        num_measured=num_measured)
    jax.block_until_ready((new_zp, new_rng, new_n, qrange, qzero))

    ref_min = jnp.min(x)
    ref_max = jnp.max(x)
    assert jnp.allclose(qzero, ref_min, atol=1e-6)
    assert jnp.allclose(qrange, ref_max - ref_min, atol=1e-6)
    assert jnp.allclose(new_zp, jnp.full((1,), ref_min), atol=1e-6)
    assert jnp.allclose(new_rng, jnp.full((1,), ref_max - ref_min), atol=1e-6)
    assert jnp.allclose(new_n, jnp.ones((1,)))

    # Second measurement step: exercises the fused momentum update (momentum=1/2).
    new_zp2, new_rng2, new_n2, _ = quant_measure_forward(
        x * 2.0, num_bits=8,
        running_zero_point=new_zp, running_range=new_rng, num_measured=new_n)
    jax.block_until_ready((new_zp2, new_rng2, new_n2))
    exp_zp2 = 0.5 * new_zp + 0.5 * (2.0 * ref_min)
    exp_rng2 = 0.5 * new_rng + 0.5 * (2.0 * (ref_max - ref_min))
    assert jnp.allclose(new_zp2, exp_zp2, rtol=1e-5, atol=1e-6)
    assert jnp.allclose(new_rng2, exp_rng2, rtol=1e-5, atol=1e-6)
    assert jnp.allclose(new_n2, jnp.full((1,), 2.0))

    # Non-128-aligned input: exercises the replicated-element padding path.
    x_odd = jax.random.normal(jax.random.PRNGKey(1), (2, 3, 5, 7), dtype=jnp.float32)
    _, _, _, (qr_odd, qz_odd) = quant_measure_forward(
        x_odd, num_bits=8,
        running_zero_point=jnp.zeros((1,), jnp.float32),
        running_range=jnp.zeros((1,), jnp.float32),
        num_measured=jnp.zeros((1,), jnp.float32))
    jax.block_until_ready((qr_odd, qz_odd))
    assert jnp.allclose(qz_odd, jnp.min(x_odd), atol=1e-6)
    assert jnp.allclose(qr_odd, jnp.max(x_odd) - jnp.min(x_odd), atol=1e-6)

    print("KERNEL_OK")
</pallas_src>

<mosaic_0001>
module attributes {stable_mosaic.version = 11 : i64} {
  func.func @_quant_measure_kernel(%arg0: i32, %arg1: memref<16x128xf32, #tpu.memory_space<vmem>>, %arg2: memref<1x1xf32, #tpu.memory_space<vmem>>, %arg3: memref<1x1xf32, #tpu.memory_space<vmem>>, %arg4: memref<1x1xf32, #tpu.memory_space<vmem>>, %arg5: memref<1x1xf32, #tpu.memory_space<vmem>>, %arg6: memref<1x1xf32, #tpu.memory_space<vmem>>, %arg7: memref<1x1xf32, #tpu.memory_space<vmem>>, %arg8: memref<1x1xf32, #tpu.memory_space<vmem>>, %arg9: memref<1x1xf32, #tpu.memory_space<vmem>>, %arg10: memref<16x128xf32, #tpu.memory_space<vmem>>, %arg11: memref<16x128xf32, #tpu.memory_space<vmem>>) attributes {dimension_semantics = [#tpu.dimension_semantics<arbitrary>], iteration_bounds = array<i64: 1>, scalar_prefetch = 0 : i64, scratch_operands = 2 : i64, tpu.core_type = #tpu.core_type<tc>, window_params = [{transform_indices = @transform_0, window_bounds = array<i64: 16, 128>}, {pipeline_mode = #tpu.pipeline_mode<synchronous>, transform_indices = @transform_1, window_bounds = array<i64: 1, 1>}, {pipeline_mode = #tpu.pipeline_mode<synchronous>, transform_indices = @transform_2, window_bounds = array<i64: 1, 1>}, {pipeline_mode = #tpu.pipeline_mode<synchronous>, transform_indices = @transform_3, window_bounds = array<i64: 1, 1>}, {pipeline_mode = #tpu.pipeline_mode<synchronous>, transform_indices = @transform_4, window_bounds = array<i64: 1, 1>}, {pipeline_mode = #tpu.pipeline_mode<synchronous>, transform_indices = @transform_5, window_bounds = array<i64: 1, 1>}, {pipeline_mode = #tpu.pipeline_mode<synchronous>, transform_indices = @transform_6, window_bounds = array<i64: 1, 1>}, {pipeline_mode = #tpu.pipeline_mode<synchronous>, transform_indices = @transform_7, window_bounds = array<i64: 1, 1>}, {pipeline_mode = #tpu.pipeline_mode<synchronous>, transform_indices = @transform_8, window_bounds = array<i64: 1, 1>}]} {
    %c0_i32 = arith.constant 0 : i32
    %0 = arith.cmpi eq, %arg0, %c0_i32 : i32
    %1 = arith.extui %0 : i1 to i32
    %c0_i32_0 = arith.constant 0 : i32
    %2 = arith.cmpi ne, %1, %c0_i32_0 : i32
    scf.if %2 {
      %cst = arith.constant 0x7F800000 : f32
      %13 = vector.broadcast %cst : f32 to vector<16x128xf32>
      %c0_12 = arith.constant 0 : index
      %c0_13 = arith.constant 0 : index
      %14 = vector.load %arg10[%c0_12, %c0_13] : memref<16x128xf32, #tpu.memory_space<vmem>>, vector<16x128xf32>
      tpu.vector_store %arg10[%c0_12, %c0_13], %13 {strides = array<i32>} : memref<16x128xf32, #tpu.memory_space<vmem>>, vector<16x128xf32>,
      %cst_14 = arith.constant 0xFF800000 : f32
      %15 = vector.broadcast %cst_14 : f32 to vector<16x128xf32>
      %c0_15 = arith.constant 0 : index
      %c0_16 = arith.constant 0 : index
      %16 = vector.load %arg11[%c0_15, %c0_16] : memref<16x128xf32, #tpu.memory_space<vmem>>, vector<16x128xf32>
      tpu.vector_store %arg11[%c0_15, %c0_16], %15 {strides = array<i32>} : memref<16x128xf32, #tpu.memory_space<vmem>>, vector<16x128xf32>,
    } else {
    }
    %c0 = arith.constant 0 : index
    %c0_1 = arith.constant 0 : index
    %3 = vector.load %arg1[%c0, %c0_1] : memref<16x128xf32, #tpu.memory_space<vmem>>, vector<16x128xf32>
    %c0_2 = arith.constant 0 : index
    %c0_3 = arith.constant 0 : index
    %4 = vector.load %arg10[%c0_2, %c0_3] : memref<16x128xf32, #tpu.memory_space<vmem>>, vector<16x128xf32>
    %5 = arith.minimumf %4, %3 : vector<16x128xf32>
    %c0_4 = arith.constant 0 : index
    %c0_5 = arith.constant 0 : index
    %6 = vector.load %arg10[%c0_4, %c0_5] : memref<16x128xf32, #tpu.memory_space<vmem>>, vector<16x128xf32>
    tpu.vector_store %arg10[%c0_4, %c0_5], %5 {strides = array<i32>} : memref<16x128xf32, #tpu.memory_space<vmem>>, vector<16x128xf32>,
    %c0_6 = arith.constant 0 : index
    %c0_7 = arith.constant 0 : index
    %7 = vector.load %arg11[%c0_6, %c0_7] : memref<16x128xf32, #tpu.memory_space<vmem>>, vector<16x128xf32>
    %8 = arith.maximumf %7, %3 : vector<16x128xf32>
    %c0_8 = arith.constant 0 : index
    %c0_9 = arith.constant 0 : index
    %9 = vector.load %arg11[%c0_8, %c0_9] : memref<16x128xf32, #tpu.memory_space<vmem>>, vector<16x128xf32>
    tpu.vector_store %arg11[%c0_8, %c0_9], %8 {strides = array<i32>} : memref<16x128xf32, #tpu.memory_space<vmem>>, vector<16x128xf32>,
    %c0_i32_10 = arith.constant 0 : i32
    %10 = arith.cmpi eq, %arg0, %c0_i32_10 : i32
    %11 = arith.extui %10 : i1 to i32
    %c0_i32_11 = arith.constant 0 : i32
    %12 = arith.cmpi ne, %11, %c0_i32_11 : i32
    scf.if %12 {
      %c0_12 = arith.constant 0 : index
      %c0_13 = arith.constant 0 : index
      %13 = vector.load %arg10[%c0_12, %c0_13] : memref<16x128xf32, #tpu.memory_space<vmem>>, vector<16x128xf32>
      %cst = arith.constant dense<0x7F800000> : vector<128xf32>
      %14 = vector.multi_reduction <minimumf>, %13, %cst [0] : vector<16x128xf32> to vector<128xf32>
      %15 = vector.shape_cast %14 : vector<128xf32> to vector<1x128xf32>
      %cst_14 = arith.constant dense<0x7F800000> : vector<1xf32>
      %16 = vector.multi_reduction <minimumf>, %15, %cst_14 [1] : vector<1x128xf32> to vector<1xf32>
      %17 = vector.shape_cast %16 : vector<1xf32> to vector<1x1xf32>
      %c0_15 = arith.constant 0 : index
      %c0_16 = arith.constant 0 : index
      %18 = vector.load %arg11[%c0_15, %c0_16] : memref<16x128xf32, #tpu.memory_space<vmem>>, vector<16x128xf32>
      %cst_17 = arith.constant dense<0xFF800000> : vector<128xf32>
      %19 = vector.multi_reduction <maximumf>, %18, %cst_17 [0] : vector<16x128xf32> to vector<128xf32>
      %20 = vector.shape_cast %19 : vector<128xf32> to vector<1x128xf32>
      %cst_18 = arith.constant dense<0xFF800000> : vector<1xf32>
      %21 = vector.multi_reduction <maximumf>, %20, %cst_18 [1] : vector<1x128xf32> to vector<1xf32>
      %22 = vector.shape_cast %21 : vector<1xf32> to vector<1x1xf32>
      %23 = arith.subf %22, %17 : vector<1x1xf32>
      %c0_19 = arith.constant 0 : index
      %c0_20 = arith.constant 0 : index
      %24 = vector.load %arg4[%c0_19, %c0_20] : memref<1x1xf32, #tpu.memory_space<vmem>>, vector<1x1xf32>
      %cst_21 = arith.constant 1.000000e+00 : f32
      %25 = vector.broadcast %cst_21 : f32 to vector<1x1xf32>
      %26 = arith.addf %24, %25 : vector<1x1xf32>
      %27 = arith.divf %24, %26 : vector<1x1xf32>
      %c0_22 = arith.constant 0 : index
      %c0_23 = arith.constant 0 : index
      %28 = vector.load %arg9[%c0_22, %c0_23] : memref<1x1xf32, #tpu.memory_space<vmem>>, vector<1x1xf32>
      tpu.vector_store %arg9[%c0_22, %c0_23], %17 {strides = array<i32>} : memref<1x1xf32, #tpu.memory_space<vmem>>, vector<1x1xf32>,
      %c0_24 = arith.constant 0 : index
      %c0_25 = arith.constant 0 : index
      %29 = vector.load %arg8[%c0_24, %c0_25] : memref<1x1xf32, #tpu.memory_space<vmem>>, vector<1x1xf32>
      tpu.vector_store %arg8[%c0_24, %c0_25], %23 {strides = array<i32>} : memref<1x1xf32, #tpu.memory_space<vmem>>, vector<1x1xf32>,
      %cst_26 = arith.constant 1.000000e+00 : f32
      %30 = vector.broadcast %cst_26 : f32 to vector<1x1xf32>
      %31 = arith.addf %24, %30 : vector<1x1xf32>
      %c0_27 = arith.constant 0 : index
      %c0_28 = arith.constant 0 : index
      %32 = vector.load %arg7[%c0_27, %c0_28] : memref<1x1xf32, #tpu.memory_space<vmem>>, vector<1x1xf32>
      tpu.vector_store %arg7[%c0_27, %c0_28], %31 {strides = array<i32>} : memref<1x1xf32, #tpu.memory_space<vmem>>, vector<1x1xf32>,
      %c0_29 = arith.constant 0 : index
      %c0_30 = arith.constant 0 : index
      %33 = vector.load %arg2[%c0_29, %c0_30] : memref<1x1xf32, #tpu.memory_space<vmem>>, vector<1x1xf32>
      %34 = arith.mulf %33, %27 : vector<1x1xf32>
      %cst_31 = arith.constant 1.000000e+00 : f32
      %35 = vector.broadcast %cst_31 : f32 to vector<1x1xf32>
      %36 = arith.subf %35, %27 : vector<1x1xf32>
      %37 = arith.mulf %17, %36 : vector<1x1xf32>
      %38 = arith.addf %34, %37 : vector<1x1xf32>
      %c0_32 = arith.constant 0 : index
      %c0_33 = arith.constant 0 : index
      %39 = vector.load %arg5[%c0_32, %c0_33] : memref<1x1xf32, #tpu.memory_space<vmem>>, vector<1x1xf32>
      tpu.vector_store %arg5[%c0_32, %c0_33], %38 {strides = array<i32>} : memref<1x1xf32, #tpu.memory_space<vmem>>, vector<1x1xf32>,
      %c0_34 = arith.constant 0 : index
      %c0_35 = arith.constant 0 : index
      %40 = vector.load %arg3[%c0_34, %c0_35] : memref<1x1xf32, #tpu.memory_space<vmem>>, vector<1x1xf32>
      %41 = arith.mulf %40, %27 : vector<1x1xf32>
      %cst_36 = arith.constant 1.000000e+00 : f32
      %42 = vector.broadcast %cst_36 : f32 to vector<1x1xf32>
      %43 = arith.subf %42, %27 : vector<1x1xf32>
      %44 = arith.mulf %23, %43 : vector<1x1xf32>
      %45 = arith.addf %41, %44 : vector<1x1xf32>
      %c0_37 = arith.constant 0 : index
      %c0_38 = arith.constant 0 : index
      %46 = vector.load %arg6[%c0_37, %c0_38] : memref<1x1xf32, #tpu.memory_space<vmem>>, vector<1x1xf32>
      tpu.vector_store %arg6[%c0_37, %c0_38], %45 {strides = array<i32>} : memref<1x1xf32, #tpu.memory_space<vmem>>, vector<1x1xf32>,
    } else {
    }
    return
  }
  func.func @transform_0(%arg0: i32) -> (i32, i32) {
    %c0_i32 = arith.constant 0 : i32
    %c0_i32_0 = arith.constant 0 : i32
    return %arg0, %c0_i32 : i32, i32
  }
  func.func @transform_1(%arg0: i32) -> (i32, i32) {
    %c0_i32 = arith.constant 0 : i32
    %c0_i32_0 = arith.constant 0 : i32
    %c0_i32_1 = arith.constant 0 : i32
    return %c0_i32, %c0_i32_0 : i32, i32
  }
  func.func @transform_2(%arg0: i32) -> (i32, i32) {
    %c0_i32 = arith.constant 0 : i32
    %c0_i32_0 = arith.constant 0 : i32
    %c0_i32_1 = arith.constant 0 : i32
    return %c0_i32, %c0_i32_0 : i32, i32
  }
  func.func @transform_3(%arg0: i32) -> (i32, i32) {
    %c0_i32 = arith.constant 0 : i32
    %c0_i32_0 = arith.constant 0 : i32
    %c0_i32_1 = arith.constant 0 : i32
    return %c0_i32, %c0_i32_0 : i32, i32
  }
  func.func @transform_4(%arg0: i32) -> (i32, i32) {
    %c0_i32 = arith.constant 0 : i32
    %c0_i32_0 = arith.constant 0 : i32
    %c0_i32_1 = arith.constant 0 : i32
    return %c0_i32, %c0_i32_0 : i32, i32
  }
  func.func @transform_5(%arg0: i32) -> (i32, i32) {
    %c0_i32 = arith.constant 0 : i32
    %c0_i32_0 = arith.constant 0 : i32
    %c0_i32_1 = arith.constant 0 : i32
    return %c0_i32, %c0_i32_0 : i32, i32
  }
  func.func @transform_6(%arg0: i32) -> (i32, i32) {
    %c0_i32 = arith.constant 0 : i32
    %c0_i32_0 = arith.constant 0 : i32
    %c0_i32_1 = arith.constant 0 : i32
    return %c0_i32, %c0_i32_0 : i32, i32
  }
  func.func @transform_7(%arg0: i32) -> (i32, i32) {
    %c0_i32 = arith.constant 0 : i32
    %c0_i32_0 = arith.constant 0 : i32
    %c0_i32_1 = arith.constant 0 : i32
    return %c0_i32, %c0_i32_0 : i32, i32
  }
  func.func @transform_8(%arg0: i32) -> (i32, i32) {
    %c0_i32 = arith.constant 0 : i32
    %c0_i32_0 = arith.constant 0 : i32
    %c0_i32_1 = arith.constant 0 : i32
    return %c0_i32, %c0_i32_0 : i32, i32
  }
}

</mosaic_0001>

<bundles_post_ra>
// kernel: _fused_quant_measure.1
= control target key start
LH: loop header
LB: loop body
LE: loop exit
PB: predicated region body
PF: predicated region fallthrough
CT: control target
= control target key end

     0   :  { %s505_s0 = inlined_call_operand.hbm [shape: f32[16,128], index: 0, kind: input, shape index: {}]   ;;  %s506_s1 = inlined_call_operand.<no memory space> [shape: f32[1,1], index: 1, kind: input, shape index: {}]   ;;  %s507_s4 = inlined_call_operand.hbm [shape: f32[1,1], index: 4, kind: output, shape index: {0}]   ;;  %s508_s5 = inlined_call_operand.hbm [shape: f32[1,1], index: 5, kind: output, shape index: {1}]   ;;  %s509_s6 = inlined_call_operand.hbm [shape: f32[1,1], index: 6, kind: output, shape index: {2}]   ;;  %s510_s7 = inlined_call_operand.hbm [shape: f32[1,1], index: 7, kind: output, shape index: {3}]   ;;  %s511_s8 = inlined_call_operand.hbm [shape: f32[1,1], index: 8, kind: output, shape index: {4}]   ;;  %s512_s2 = inlined_call_operand.<no memory space> [shape: f32[1,1], index: 2, kind: input, shape index: {}]   ;;  %s513_s3 = inlined_call_operand.<no memory space> [shape: f32[1,1], index: 3, kind: input, shape index: {}]  }
   0x1   :  { %v14_v0 = vstv %s506_s1  ;;  %v16_v1 = vstv %s512_s2  ;;  %v18_v2 = vstv %s513_s3 }
   0x2   :  { %15 = vst [vmem:[#allocation4] sm:$0x1] %v14_v0  ;;  %17 = vst [vmem:[#allocation5] sm:$0x1] %v16_v1 }
   0x3   :  { %19 = vst [vmem:[#allocation6] sm:$0x1] %v18_v2 }
   0x4   :  { %20 = vsyncpa [#allocation8], 0 }
   0x5   :  { %21 = vsyncpa [#allocation9], 0 }
   0x6   :  { %22 = vsyncpa [#allocation12], 0 }
   0x7   :  { %23 = vsyncpa [#allocation15], 0  ;;  %s331_s11 = smov [#allocation7]   ;;  %s191_s14 = scalar_lea.hbm %s505_s0, 256 }
   0x8   :  { %s29_s12 = sshll.u32 %s331_s11, 4  ;;  %p192_p0 = scmp.ne.s32.totalorder %s505_s0, %s191_s14  ;;  %s30_s12 = int_to_ptr.vmem [resolvable:$true] %s29_s12 }
   0x9   :  { %p195_p1 = scmp.lt.u32.totalorder %s191_s14, %s505_s0 }
   0xb   :  { %p197_p2 = pnand %p195_p1, %p192_p0 }
   0xd   :  { %200 = shalt.err (!%p197_p2)
}
   0xe   :  { %s201_s17 = scalar_lea.vmem %s30_s12, 256  ;;  %p206_p4 = scmp.lt.s32.totalorder %s30_s12, %s30_s12 }
   0xf   :  { %p202_p3 = scmp.ne.s32.totalorder %s30_s12, %s201_s17  ;;  %p207_p5 = scmp.lt.s32.totalorder %s201_s17, %s201_s17 }
  0x11   :  { %p208_p6 = por %p207_p5, %p206_p4 }
  0x13   :  { %p209_p7 = pnand %p208_p6, %p202_p3 }
  0x15   :  { %212 = shalt.err (!%p209_p7)
}
  0x16   :  { %s332_s18 = smov 128   ;;  %s333_s19 = smov 8  }
  0x17   :  { %35 = dma.hbm_to_vmem [thread:$0]  %s505_s0, 256, %s30_s12, [#allocation8], %s332_s18, %s332_s18, %s333_s19  }
  0x18   :  { %323 = dma.done.wait [#allocation8], 256  }
  0x19   :  { %324 = vsyncadd [#allocation8], 4294967040  ;;  %v53_v3 = vld [vmem:[#allocation7] sm:$0xff]  ;;  %v54_v4 = vld [vmem:[#allocation7 + $0x8] sm:$0xff]  ;;  %vm97_vm0 = vcmask 0   ;;  %s334_s0 = smov [#allocation10]  }
  0x1a   :  { %v93_v5 = vld [vmem:[#allocation6] sm:$0x1]  ;;  %v72_v6 = vmin.f32 %v53_v3, %v54_v4  ;;  %v83_v7 = vmax.f32 %v53_v3, %v54_v4  ;;  %v101_v23 = vld [vmem:[#allocation4] sm:$0x1]  ;;  %s118_s22 = sshll.u32 %s334_s0, 4  ;;  %s335_s23 = smov [#allocation14]   ;;  %s119_s22 = int_to_ptr.vmem [resolvable:$true] %s118_s22 }
  0x1b   :  { %v94_v8 = vadd.f32 1.0, %v93_v5  ;;  %v107_v28 = vld [vmem:[#allocation5] sm:$0x1]  ;;  %s148_s24 = sshll.u32 %s335_s23, 4  ;;  %s336_s25 = smov [#allocation16]   ;;  %s408_s24 = int_to_ptr.vmem [resolvable:$true] %s148_s24 }
  0x1c   :  { %v73_v9 = vrot.slane %v72_v6, 4  ;;  %v84_v10 = vrot.slane %v83_v7, 4  ;;  %s158_s26 = sshll.u32 %s336_s25, 4  ;;  %s337_s27 = smov [#allocation11]   ;;  %s410_s26 = int_to_ptr.vmem [resolvable:$true] %s158_s26 }
  0x1d   :  { %189 = vrcp.f32 %v94_v8  ;;  %100 = vst.msk [vmem:[#allocation13] sm:$0x1] %vm97_vm0, %v94_v8  ;;  %s128_s28 = sshll.u32 %s337_s27, 4  ;;  %s213_s29 = scalar_lea.vmem %s119_s22, 16  ;;  %s424_s28 = int_to_ptr.vmem [resolvable:$true] %s128_s28 }
  0x1e   :  { %v74_v11 = vmin.f32 %v72_v6, %v73_v9  ;;  %v85_v12 = vmax.f32 %v83_v7, %v84_v10  ;;  %p214_p8 = scmp.ne.s32.totalorder %s119_s22, %s213_s29  ;;  %s217_s30 = scalar_lea.vmem %s119_s22, 32 }
  0x1f   :  { %p218_p9 = scmp.lt.s32.totalorder %s119_s22, %s119_s22  ;;  %p219_p10 = scmp.lt.s32.totalorder %s217_s30, %s213_s29 }
  0x20   :  { %v75_v13 = vrot.slane %v74_v11, 2  ;;  %v86_v14 = vrot.slane %v85_v12, 2 }
  0x21   :  { %p220_p11 = por %p219_p10, %p218_p9 }
  0x22   :  { %v76_v15 = vmin.f32 %v74_v11, %v75_v13  ;;  %v87_v16 = vmax.f32 %v85_v12, %v86_v14 }
  0x23   :  { %p221_p12 = pnand %p220_p11, %p214_p8 }
  0x24   :  { %v77_v17 = vrot.slane %v76_v15, 1  ;;  %v88_v18 = vrot.slane %v87_v16, 1 }
  0x26   :  { %v78_v20 = vmin.f32 %v76_v15, %v77_v17  ;;  %v89_v22 = vmax.f32 %v87_v16, %v88_v18 }
  0x27   :  { %v190_v19 = vpop.eup %189 }
  0x28   :  { %v96_v21 = vmul.f32 %v190_v19, %v93_v5  ;;  %79 = vmin.xlane.f32.xlu0 %v78_v20 }
  0x2a   :  { %v103_v24 = vsub.f32 1.0, %v96_v21  ;;  %v102_v25 = vmul.f32 %v101_v23, %v96_v21  ;;  %v108_v31 = vmul.f32 %v107_v28, %v96_v21 }
  0x2c   :  { %90 = vmax.xlane.f32.xlu0 %v89_v22 }
  0xb5   :  { %v80_v26 = vpop.xlane.xlu0 %79 }
  0xb6   :  { %v104_v27 = vmul.f32 %v103_v24, %v80_v26  ;;  %98 = vst.msk [vmem:[#allocation16] sm:$0x1] %vm97_vm0, %v80_v26 }
  0xb8   :  { %v105_v29 = vadd.f32 %v104_v27, %v102_v25 }
  0xb9   :  { %v91_v30 = vpop.xlane.xlu0 %90 }
  0xba   :  { %v92_v32 = vsub.f32 %v91_v30, %v80_v26  ;;  %106 = vst.msk [vmem:[#allocation10] sm:$0x1] %vm97_vm0, %v105_v29 }
  0xbb   :  { %224 = shalt.err (!%p221_p12)
}
  0xbc   :  { %s225_s11 = scalar_lea.hbm %s507_s4, 16 }
  0xbd   :  { %p226_p13 = scmp.ne.s32.totalorder %s507_s4, %s225_s11  ;;  %p229_p0 = scmp.lt.u32.totalorder %s225_s11, %s507_s4 }
  0xbf   :  { %p231_p1 = pnand %p229_p0, %p226_p13 }
  0xc1   :  { %234 = shalt.err (!%p231_p1)
}
  0xc2   :  { %121 = dma.vmem_to_hbm [thread:$0]  %s119_s22, 16, %s507_s4, [#allocation9]   ;;  %v109_v33 = vmul.f32 %v103_v24, %v92_v32  ;;  %99 = vst.msk [vmem:[#allocation14] sm:$0x1] %vm97_vm0, %v92_v32 }
  0xc3   :  { %s338_s16 = smov [#allocation13]   ;;  %s235_s17 = scalar_lea.vmem %s408_s24, 16 }
  0xc4   :  { %s427_s3 = sshll.u32 %s338_s16, 4  ;;  %p236_p2 = scmp.ne.s32.totalorder %s408_s24, %s235_s17  ;;  %s466_s3 = int_to_ptr.vmem [resolvable:$true] %s427_s3 }
  0xc5   :  { %s239_s18 = scalar_lea.vmem %s408_s24, 32  ;;  %p240_p3 = scmp.lt.s32.totalorder %s408_s24, %s408_s24 }
  0xc6   :  { %p241_p4 = scmp.lt.s32.totalorder %s239_s18, %s235_s17 }
  0xc8   :  { %p242_p5 = por %p241_p4, %p240_p3 }
  0xca   :  { %p243_p6 = pnand %p242_p5, %p236_p2 }
  0xcc   :  { %246 = shalt.err (!%p243_p6)
}
  0xcd   :  { %s247_s4 = scalar_lea.hbm %s510_s7, 16 }
  0xce   :  { %p248_p7 = scmp.ne.s32.totalorder %s510_s7, %s247_s4  ;;  %p251_p8 = scmp.lt.u32.totalorder %s247_s4, %s510_s7 }
  0xd0   :  { %p253_p9 = pnand %p251_p8, %p248_p7 }
  0xd2   :  { %256 = shalt.err (!%p253_p9)
}
  0xd3   :  { %151 = dma.vmem_to_hbm [thread:$0]  %s408_s24, 16, %s510_s7, [#allocation15]   ;;  %v110_v34 = vadd.f32 %v109_v33, %v108_v31 }
  0xd4   :  { %s257_s29 = scalar_lea.vmem %s410_s26, 16  ;;  %s261_s30 = scalar_lea.vmem %s410_s26, 32 }
  0xd5   :  { %p258_p10 = scmp.ne.s32.totalorder %s410_s26, %s257_s29  ;;  %p262_p11 = scmp.lt.s32.totalorder %s410_s26, %s410_s26 }
  0xd6   :  { %p263_p12 = scmp.lt.s32.totalorder %s261_s30, %s257_s29 }
  0xd8   :  { %p264_p13 = por %p263_p12, %p262_p11 }
  0xda   :  { %p265_p0 = pnand %p264_p13, %p258_p10 }
  0xdc   :  { %268 = shalt.err (!%p265_p0)
}
  0xdd   :  { %s269_s11 = scalar_lea.hbm %s511_s8, 16 }
  0xde   :  { %p270_p1 = scmp.ne.s32.totalorder %s511_s8, %s269_s11  ;;  %p273_p2 = scmp.lt.u32.totalorder %s269_s11, %s511_s8 }
  0xe0   :  { %p275_p3 = pnand %p273_p2, %p270_p1 }
  0xe2   :  { %278 = shalt.err (!%p275_p3)
}
  0xe3   :  { %161 = dma.vmem_to_hbm [thread:$0]  %s410_s26, 16, %s511_s8, [#allocation15]   ;;  %111 = vst.msk [vmem:[#allocation11] sm:$0x1] %vm97_vm0, %v110_v34 }
  0xe4   :  { %s279_s15 = scalar_lea.vmem %s424_s28, 16  ;;  %s283_s2 = scalar_lea.vmem %s424_s28, 32 }
  0xe5   :  { %p280_p4 = scmp.ne.s32.totalorder %s424_s28, %s279_s15  ;;  %p284_p5 = scmp.lt.s32.totalorder %s424_s28, %s424_s28 }
  0xe6   :  { %p285_p6 = scmp.lt.s32.totalorder %s283_s2, %s279_s15 }
  0xe8   :  { %p286_p7 = por %p285_p6, %p284_p5 }
  0xea   :  { %p287_p8 = pnand %p286_p7, %p280_p4 }
  0xec   :  { %290 = shalt.err (!%p287_p8)
}
  0xed   :  { %s291_s18 = scalar_lea.hbm %s508_s5, 16 }
  0xee   :  { %p292_p9 = scmp.ne.s32.totalorder %s508_s5, %s291_s18  ;;  %p295_p10 = scmp.lt.u32.totalorder %s291_s18, %s508_s5 }
  0xf0   :  { %p297_p11 = pnand %p295_p10, %p292_p9 }
  0xf2   :  { %300 = shalt.err (!%p297_p11)
}
  0xf3   :  { %131 = dma.vmem_to_hbm [thread:$0]  %s424_s28, 16, %s508_s5, [#allocation12]  }
  0xf4   :  { %s301_s0 = scalar_lea.vmem %s466_s3, 16  ;;  %s305_s22 = scalar_lea.vmem %s466_s3, 32 }
  0xf5   :  { %p302_p12 = scmp.ne.s32.totalorder %s466_s3, %s301_s0  ;;  %p306_p13 = scmp.lt.s32.totalorder %s466_s3, %s466_s3 }
  0xf6   :  { %p307_p0 = scmp.lt.s32.totalorder %s305_s22, %s301_s0 }
  0xf8   :  { %p308_p1 = por %p307_p0, %p306_p13 }
  0xfa   :  { %p309_p2 = pnand %p308_p1, %p302_p12 }
  0xfc   :  { %312 = shalt.err (!%p309_p2)
}
  0xfd   :  { %s313_s27 = scalar_lea.hbm %s509_s6, 16 }
  0xfe   :  { %p314_p3 = scmp.ne.s32.totalorder %s509_s6, %s313_s27  ;;  %p317_p4 = scmp.lt.u32.totalorder %s313_s27, %s509_s6 }
 0x100   :  { %p319_p5 = pnand %p317_p4, %p314_p3 }
 0x102   :  { %322 = shalt.err (!%p319_p5)
}
 0x103   :  { %141 = dma.vmem_to_hbm [thread:$0]  %s466_s3, 16, %s509_s6, [#allocation12]  }
 0x104   :  { %325 = dma.done.wait [#allocation9], 16  }
 0x105   :  { %326 = vsyncadd [#allocation9], 4294967280 }
 0x106   :  { %327 = dma.done.wait [#allocation12], 32  }
 0x107   :  { %328 = vsyncadd [#allocation12], 4294967264 }
 0x108   :  { %329 = dma.done.wait [#allocation15], 32  }
 0x109   :  { %330 = vsyncadd [#allocation15], 4294967264 }
 0x10a   :  { %177 = vsyncpa [#allocation8], 1 }
 0x10b   :  { %178 = vsyncpa [#allocation9], 1 }
 0x10c   :  { %179 = vsyncpa [#allocation12], 1 }
 0x10d   :  { %180 = vsyncpa [#allocation15], 1 }

</bundles_post_ra>
